<compile_context>
chip_gen: v7x
topology: tpu7x:2x2x1
jax: 0.10.0
libtpu: 0.0.40
codegen_flags: <defaults>
</compile_context>

<pallas_src>
import functools
import math

import jax
import jax.numpy as jnp
from jax.experimental import pallas as pl
from jax.experimental.pallas import tpu as pltpu


# ---------------------------------------------------------------------------
# Config (small, deterministic synthetic shapes)
# ---------------------------------------------------------------------------
NUM_EDGES = 8
NUM_IN_FEATS = 4
HIDDEN_SIZES = [32, 32]
OUT_EMBEDDING_SIZE = 16
BATCH = 2
SEQ = 8

MAX_ROW_TILE = 256   # used only when N is large; small N runs as one fat tile
LANE = 128


def _round_up(x, m):
    return pl.cdiv(x, m) * m


# ---------------------------------------------------------------------------
# Pallas kernel: fused one-hot + 3-layer MLP (Lin->LN->ReLU, Lin->LN->ReLU, Lin)
# ---------------------------------------------------------------------------
def _mlp_kernel(edges_ref, feats_ref, w_ref, v_ref, out_ref, *,
                ne_pad, f_pad, h1, h2, eps):
    rows, width = out_ref.shape

    edges = edges_ref[...]                                   # [rows, 1] int32
    feats = feats_ref[...]                                   # [rows, f_pad] f32

    # Fused one-hot: built in-register (no HBM intermediate, no concat op).
    e_iota = jax.lax.broadcasted_iota(jnp.int32, (rows, ne_pad), 1)
    one_hot = (e_iota == edges).astype(jnp.float32)          # [rows, ne_pad]

    # Packed parameter slab: static, sublane-aligned slices (free).
    w1e = w_ref[pl.ds(0, ne_pad), :]                         # [ne_pad, width]
    w1f = w_ref[pl.ds(ne_pad, f_pad), :]                     # [f_pad,  width]
    w2 = w_ref[pl.ds(ne_pad + f_pad, width), :]              # [width,  width]
    w3 = w_ref[pl.ds(ne_pad + f_pad + width, width), :]      # [width,  width]

    v = v_ref[...]                                           # [8, width]
    b1, g1, be1 = v[0:1, :], v[1:2, :], v[2:3, :]
    b2, g2, be2 = v[3:4, :], v[4:5, :], v[5:6, :]
    b3 = v[6:7, :]

    lane = jax.lax.broadcasted_iota(jnp.int32, (rows, width), 1)

    def masked_layer_norm(h, real_width, gamma, beta):
        # Lanes >= real_width of h are exactly zero (zero-padded weights/bias),
        # so the sum over all `width` lanes equals the sum over the real ones.
        mask = (lane < real_width).astype(jnp.float32)
        mu = jnp.sum(h, axis=-1, keepdims=True) / real_width
        d = (h - mu) * mask
        var = jnp.sum(d * d, axis=-1, keepdims=True) / real_width
        # gamma/beta are zero-padded -> padded lanes come out exactly zero.
        return d * jax.lax.rsqrt(var + eps) * gamma + beta

    # layer 1: Linear -> LayerNorm -> ReLU   (lane-dense at `width`)
    h = (jnp.dot(one_hot, w1e, preferred_element_type=jnp.float32)
         + jnp.dot(feats, w1f, preferred_element_type=jnp.float32)
         + b1)
    h = jnp.maximum(masked_layer_norm(h, h1, g1, be1), 0.0)

    # layer 2: Linear -> LayerNorm -> ReLU
    h = jnp.dot(h, w2, preferred_element_type=jnp.float32) + b2
    h = jnp.maximum(masked_layer_norm(h, h2, g2, be2), 0.0)

    # layer 3: Linear only (relu_last=False, layer_norm_last=False)
    out = jnp.dot(h, w3, preferred_element_type=jnp.float32) + b3
    out_ref[...] = out.astype(out_ref.dtype)                 # full 128-lane vst


# ---------------------------------------------------------------------------
# Parameter packing: 11 tiny arrays -> 2 lane-dense slabs
# ---------------------------------------------------------------------------
def pack_params(params, *, num_edges, num_in_feats):
    (w1, b1, g1, be1), (w2, b2, g2, be2), (w3, b3) = params
    h1, h2, d_out = w1.shape[1], w2.shape[1], w3.shape[1]
    width = max(LANE, _round_up(max(h1, h2, d_out), LANE))
    ne_pad = _round_up(num_edges, 8)
    f_pad = _round_up(num_in_feats, 8)

    rows_total = ne_pad + f_pad + width + width
    w_slab = jnp.zeros((rows_total, width), jnp.float32)
    w_slab = w_slab.at[:num_edges, :h1].set(w1[:num_edges])          # w1 (edge rows)
    w_slab = w_slab.at[ne_pad:ne_pad + num_in_feats, :h1].set(w1[num_edges:])
    off = ne_pad + f_pad
    w_slab = w_slab.at[off:off + h1, :h2].set(w2)
    off += width
    w_slab = w_slab.at[off:off + h2, :d_out].set(w3)

    v_slab = jnp.zeros((8, width), jnp.float32)
    v_slab = v_slab.at[0, :h1].set(b1[0])
    v_slab = v_slab.at[1, :h1].set(g1[0])
    v_slab = v_slab.at[2, :h1].set(be1[0])
    v_slab = v_slab.at[3, :h2].set(b2[0])
    v_slab = v_slab.at[4, :h2].set(g2[0])
    v_slab = v_slab.at[5, :h2].set(be2[0])
    v_slab = v_slab.at[6, :d_out].set(b3[0])
    return w_slab, v_slab


# ---------------------------------------------------------------------------
# Forward wrapper
# ---------------------------------------------------------------------------
@functools.partial(
    jax.jit,
    static_argnames=("num_edges", "num_in_feats", "h1", "h2", "out_dim"))
def edge_embedding_forward(edges, edge_feats, w_slab, v_slab, *,
                           num_edges, num_in_feats, h1, h2, out_dim):
    """edges: int32 [B, S]; edge_feats: f32 [B, S, num_in_feats]."""
    lead_shape = edges.shape
    n = math.prod(lead_shape)
    width = w_slab.shape[-1]
    ne_pad = _round_up(num_edges, 8)
    f_pad = _round_up(num_in_feats, 8)

    e2 = edges.reshape(n, 1).astype(jnp.int32)
    f2 = edge_feats.reshape(n, num_in_feats).astype(jnp.float32)
    if f_pad != num_in_feats:
        f2 = jnp.pad(f2, ((0, 0), (0, f_pad - num_in_feats)))

    # Row tiling: one fat tile when small, 256-row "parallel" tiles at scale.
    n8 = _round_up(max(n, 8), 8)
    row_tile = n8 if n8 <= MAX_ROW_TILE else MAX_ROW_TILE
    n_pad = _round_up(n8, row_tile)
    if n_pad != n:
        e2 = jnp.pad(e2, ((0, n_pad - n), (0, 0)))
        f2 = jnp.pad(f2, ((0, n_pad - n), (0, 0)))

    kernel = functools.partial(
        _mlp_kernel, ne_pad=ne_pad, f_pad=f_pad, h1=h1, h2=h2, eps=1e-5)

    out = pl.pallas_call(
        kernel,
        out_shape=jax.ShapeDtypeStruct((n_pad, width), jnp.float32),
        grid_spec=pltpu.PrefetchScalarGridSpec(
            num_scalar_prefetch=0,
            grid=(n_pad // row_tile,),
            in_specs=[
                pl.BlockSpec((row_tile, 1), lambda i: (i, 0)),       # edges
                pl.BlockSpec((row_tile, f_pad), lambda i: (i, 0)),   # feats
                pl.BlockSpec(w_slab.shape, lambda i: (0, 0)),        # weight slab
                pl.BlockSpec(v_slab.shape, lambda i: (0, 0)),        # bias/ln slab
            ],
            out_specs=pl.BlockSpec((row_tile, width), lambda i: (i, 0)),
        ),
        compiler_params=pltpu.CompilerParams(
            dimension_semantics=("parallel",)),
    )(e2, f2, w_slab, v_slab)

    out = out[:n, :out_dim]
    return out.reshape(*lead_shape, out_dim)


# ---------------------------------------------------------------------------
# Parameter init (deterministic) + pure-JAX reference
# ---------------------------------------------------------------------------
def init_params(key):
    sizes = [NUM_EDGES + NUM_IN_FEATS] + HIDDEN_SIZES + [OUT_EMBEDDING_SIZE]
    params = []
    for i in range(len(sizes) - 1):
        fan_in, fan_out = sizes[i], sizes[i + 1]
        key, kw, kb = jax.random.split(key, 3)
        bound = 1.0 / jnp.sqrt(fan_in)
        w = jax.random.uniform(kw, (fan_in, fan_out), jnp.float32, -bound, bound)
        b = jax.random.uniform(kb, (1, fan_out), jnp.float32, -bound, bound)
        is_last = i == len(sizes) - 2
        if not is_last:
            gamma = jnp.ones((1, fan_out), jnp.float32)
            beta = jnp.zeros((1, fan_out), jnp.float32)
            params.append((w, b, gamma, beta))
        else:
            params.append((w, b))
    return tuple(params)


def reference_forward(edges, edge_feats, params, num_edges):
    one_hot = jax.nn.one_hot(edges, num_edges, dtype=edge_feats.dtype)
    h = jnp.concatenate([one_hot, edge_feats], axis=-1)
    (w1, b1, g1, be1), (w2, b2, g2, be2), (w3, b3) = params
    for (w, b, g, be) in [(w1, b1, g1, be1), (w2, b2, g2, be2)]:
        h = h @ w + b
        mu = jnp.mean(h, axis=-1, keepdims=True)
        var = jnp.mean(jnp.square(h - mu), axis=-1, keepdims=True)
        h = (h - mu) * jax.lax.rsqrt(var + 1e-5) * g + be
        h = jnp.maximum(h, 0.0)
    return h @ w3 + b3


# ---------------------------------------------------------------------------
if __name__ == "__main__":
    key = jax.random.PRNGKey(0)
    k_p, k_e, k_f = jax.random.split(key, 3)

    params = init_params(k_p)
    edges = jax.random.randint(k_e, (BATCH, SEQ), 0, NUM_EDGES, dtype=jnp.int32)
    edge_feats = jax.random.normal(k_f, (BATCH, SEQ, NUM_IN_FEATS), jnp.float32)

    w_slab, v_slab = pack_params(
        params, num_edges=NUM_EDGES, num_in_feats=NUM_IN_FEATS)

    out = edge_embedding_forward(
        edges, edge_feats, w_slab, v_slab,
        num_edges=NUM_EDGES, num_in_feats=NUM_IN_FEATS,
        h1=HIDDEN_SIZES[0], h2=HIDDEN_SIZES[1], out_dim=OUT_EMBEDDING_SIZE)
    out = jax.block_until_ready(out)

    ref = reference_forward(edges, edge_feats, params, NUM_EDGES)
    assert out.shape == (BATCH, SEQ, OUT_EMBEDDING_SIZE), out.shape
    assert jnp.allclose(out, ref, atol=2e-5, rtol=2e-5), "mismatch vs reference"

    print("KERNEL_OK")
</pallas_src>

<mosaic_0001>
module attributes {stable_mosaic.version = 11 : i64} {
  func.func @_mlp_kernel(%arg0: i32, %arg1: memref<16x1xi32, #tpu.memory_space<vmem>>, %arg2: memref<16x8xf32, #tpu.memory_space<vmem>>, %arg3: memref<272x128xf32, #tpu.memory_space<vmem>>, %arg4: memref<8x128xf32, #tpu.memory_space<vmem>>, %arg5: memref<16x128xf32, #tpu.memory_space<vmem>>) attributes {dimension_semantics = [#tpu.dimension_semantics<parallel>], iteration_bounds = array<i64: 1>, scalar_prefetch = 0 : i64, scratch_operands = 0 : i64, tpu.core_type = #tpu.core_type<tc>, window_params = [{transform_indices = @transform_0, window_bounds = array<i64: 16, 1>}, {transform_indices = @transform_1, window_bounds = array<i64: 16, 8>}, {pipeline_mode = #tpu.pipeline_mode<synchronous>, transform_indices = @transform_2, window_bounds = array<i64: 272, 128>}, {pipeline_mode = #tpu.pipeline_mode<synchronous>, transform_indices = @transform_3, window_bounds = array<i64: 8, 128>}, {transform_indices = @transform_4, window_bounds = array<i64: 16, 128>}]} {
    %c0 = arith.constant 0 : index
    %c0_0 = arith.constant 0 : index
    %0 = vector.load %arg1[%c0, %c0_0] : memref<16x1xi32, #tpu.memory_space<vmem>>, vector<16x1xi32>
    %c0_1 = arith.constant 0 : index
    %c0_2 = arith.constant 0 : index
    %1 = vector.load %arg2[%c0_1, %c0_2] : memref<16x8xf32, #tpu.memory_space<vmem>>, vector<16x8xf32>
    %2 = tpu.iota {dimensions = array<i32: 1>} : vector<16x8xi32>
    %3 = vector.broadcast %0 : vector<16x1xi32> to vector<16x8xi32>
    %4 = arith.cmpi eq, %2, %3 : vector<16x8xi32>
    %5 = arith.extui %4 : vector<16x8xi1> to vector<16x8xi32>
    %6 = arith.sitofp %5 : vector<16x8xi32> to vector<16x8xf32>
    %c0_3 = arith.constant 0 : index
    %c0_4 = arith.constant 0 : index
    %7 = vector.load %arg3[%c0_3, %c0_4] : memref<272x128xf32, #tpu.memory_space<vmem>>, vector<8x128xf32>
    %c8 = arith.constant 8 : index
    %c0_5 = arith.constant 0 : index
    %8 = vector.load %arg3[%c8, %c0_5] : memref<272x128xf32, #tpu.memory_space<vmem>>, vector<8x128xf32>
    %c16 = arith.constant 16 : index
    %c0_6 = arith.constant 0 : index
    %9 = vector.load %arg3[%c16, %c0_6] : memref<272x128xf32, #tpu.memory_space<vmem>>, vector<128x128xf32>
    %c144 = arith.constant 144 : index
    %c0_7 = arith.constant 0 : index
    %10 = vector.load %arg3[%c144, %c0_7] : memref<272x128xf32, #tpu.memory_space<vmem>>, vector<128x128xf32>
    %c0_8 = arith.constant 0 : index
    %c0_9 = arith.constant 0 : index
    %11 = vector.load %arg4[%c0_8, %c0_9] : memref<8x128xf32, #tpu.memory_space<vmem>>, vector<8x128xf32>
    %12 = vector.extract_strided_slice %11 {offsets = [0, 0], sizes = [1, 128], strides = [1, 1]} : vector<8x128xf32> to vector<1x128xf32>
    %13 = vector.extract_strided_slice %11 {offsets = [1, 0], sizes = [1, 128], strides = [1, 1]} : vector<8x128xf32> to vector<1x128xf32>
    %14 = vector.extract_strided_slice %11 {offsets = [2, 0], sizes = [1, 128], strides = [1, 1]} : vector<8x128xf32> to vector<1x128xf32>
    %15 = vector.extract_strided_slice %11 {offsets = [3, 0], sizes = [1, 128], strides = [1, 1]} : vector<8x128xf32> to vector<1x128xf32>
    %16 = vector.extract_strided_slice %11 {offsets = [4, 0], sizes = [1, 128], strides = [1, 1]} : vector<8x128xf32> to vector<1x128xf32>
    %17 = vector.extract_strided_slice %11 {offsets = [5, 0], sizes = [1, 128], strides = [1, 1]} : vector<8x128xf32> to vector<1x128xf32>
    %18 = vector.extract_strided_slice %11 {offsets = [6, 0], sizes = [1, 128], strides = [1, 1]} : vector<8x128xf32> to vector<1x128xf32>
    %19 = tpu.iota {dimensions = array<i32: 1>} : vector<16x128xi32>
    %cst = arith.constant dense<0.000000e+00> : vector<16x128xf32>
    %20 = tpu.matmul %6, %7, %cst {dimension_numbers = #tpu.dot_dimension_numbers<[1], [0], [0], [1], [0, 0, 1, 1], [], []>} : vector<16x8xf32>, vector<8x128xf32>, vector<16x128xf32> -> vector<16x128xf32>
    %cst_10 = arith.constant dense<0.000000e+00> : vector<16x128xf32>
    %21 = tpu.matmul %1, %8, %cst_10 {dimension_numbers = #tpu.dot_dimension_numbers<[1], [0], [0], [1], [0, 0, 1, 1], [], []>} : vector<16x8xf32>, vector<8x128xf32>, vector<16x128xf32> -> vector<16x128xf32>
    %22 = arith.addf %20, %21 : vector<16x128xf32>
    %23 = vector.broadcast %12 : vector<1x128xf32> to vector<16x128xf32>
    %24 = arith.addf %22, %23 : vector<16x128xf32>
    %c32_i32 = arith.constant 32 : i32
    %25 = vector.broadcast %c32_i32 : i32 to vector<16x128xi32>
    %26 = arith.cmpi slt, %19, %25 : vector<16x128xi32>
    %27 = arith.extui %26 : vector<16x128xi1> to vector<16x128xi32>
    %28 = arith.sitofp %27 : vector<16x128xi32> to vector<16x128xf32>
    %cst_11 = arith.constant dense<0.000000e+00> : vector<16xf32>
    %29 = vector.multi_reduction <add>, %24, %cst_11 [1] : vector<16x128xf32> to vector<16xf32>
    %30 = vector.shape_cast %29 : vector<16xf32> to vector<16x1xf32>
    %cst_12 = arith.constant 3.200000e+01 : f32
    %31 = vector.broadcast %cst_12 : f32 to vector<16x1xf32>
    %32 = arith.divf %30, %31 : vector<16x1xf32>
    %33 = vector.broadcast %32 : vector<16x1xf32> to vector<16x128xf32>
    %34 = arith.subf %24, %33 : vector<16x128xf32>
    %35 = arith.mulf %34, %28 : vector<16x128xf32>
    %36 = arith.mulf %35, %35 : vector<16x128xf32>
    %cst_13 = arith.constant dense<0.000000e+00> : vector<16xf32>
    %37 = vector.multi_reduction <add>, %36, %cst_13 [1] : vector<16x128xf32> to vector<16xf32>
    %38 = vector.shape_cast %37 : vector<16xf32> to vector<16x1xf32>
    %cst_14 = arith.constant 3.200000e+01 : f32
    %39 = vector.broadcast %cst_14 : f32 to vector<16x1xf32>
    %40 = arith.divf %38, %39 : vector<16x1xf32>
    %cst_15 = arith.constant 9.99999974E-6 : f32
    %41 = vector.broadcast %cst_15 : f32 to vector<16x1xf32>
    %42 = arith.addf %40, %41 : vector<16x1xf32>
    %43 = math.rsqrt %42 : vector<16x1xf32>
    %44 = vector.broadcast %43 : vector<16x1xf32> to vector<16x128xf32>
    %45 = arith.mulf %35, %44 : vector<16x128xf32>
    %46 = vector.broadcast %13 : vector<1x128xf32> to vector<16x128xf32>
    %47 = arith.mulf %45, %46 : vector<16x128xf32>
    %48 = vector.broadcast %14 : vector<1x128xf32> to vector<16x128xf32>
    %49 = arith.addf %47, %48 : vector<16x128xf32>
    %cst_16 = arith.constant 0.000000e+00 : f32
    %50 = vector.broadcast %cst_16 : f32 to vector<16x128xf32>
    %51 = arith.maximumf %49, %50 : vector<16x128xf32>
    %cst_17 = arith.constant dense<0.000000e+00> : vector<16x128xf32>
    %52 = tpu.matmul %51, %9, %cst_17 {dimension_numbers = #tpu.dot_dimension_numbers<[1], [0], [0], [1], [0, 0, 1, 1], [], []>} : vector<16x128xf32>, vector<128x128xf32>, vector<16x128xf32> -> vector<16x128xf32>
    %53 = vector.broadcast %15 : vector<1x128xf32> to vector<16x128xf32>
    %54 = arith.addf %52, %53 : vector<16x128xf32>
    %c32_i32_18 = arith.constant 32 : i32
    %55 = vector.broadcast %c32_i32_18 : i32 to vector<16x128xi32>
    %56 = arith.cmpi slt, %19, %55 : vector<16x128xi32>
    %57 = arith.extui %56 : vector<16x128xi1> to vector<16x128xi32>
    %58 = arith.sitofp %57 : vector<16x128xi32> to vector<16x128xf32>
    %cst_19 = arith.constant dense<0.000000e+00> : vector<16xf32>
    %59 = vector.multi_reduction <add>, %54, %cst_19 [1] : vector<16x128xf32> to vector<16xf32>
    %60 = vector.shape_cast %59 : vector<16xf32> to vector<16x1xf32>
    %cst_20 = arith.constant 3.200000e+01 : f32
    %61 = vector.broadcast %cst_20 : f32 to vector<16x1xf32>
    %62 = arith.divf %60, %61 : vector<16x1xf32>
    %63 = vector.broadcast %62 : vector<16x1xf32> to vector<16x128xf32>
    %64 = arith.subf %54, %63 : vector<16x128xf32>
    %65 = arith.mulf %64, %58 : vector<16x128xf32>
    %66 = arith.mulf %65, %65 : vector<16x128xf32>
    %cst_21 = arith.constant dense<0.000000e+00> : vector<16xf32>
    %67 = vector.multi_reduction <add>, %66, %cst_21 [1] : vector<16x128xf32> to vector<16xf32>
    %68 = vector.shape_cast %67 : vector<16xf32> to vector<16x1xf32>
    %cst_22 = arith.constant 3.200000e+01 : f32
    %69 = vector.broadcast %cst_22 : f32 to vector<16x1xf32>
    %70 = arith.divf %68, %69 : vector<16x1xf32>
    %cst_23 = arith.constant 9.99999974E-6 : f32
    %71 = vector.broadcast %cst_23 : f32 to vector<16x1xf32>
    %72 = arith.addf %70, %71 : vector<16x1xf32>
    %73 = math.rsqrt %72 : vector<16x1xf32>
    %74 = vector.broadcast %73 : vector<16x1xf32> to vector<16x128xf32>
    %75 = arith.mulf %65, %74 : vector<16x128xf32>
    %76 = vector.broadcast %16 : vector<1x128xf32> to vector<16x128xf32>
    %77 = arith.mulf %75, %76 : vector<16x128xf32>
    %78 = vector.broadcast %17 : vector<1x128xf32> to vector<16x128xf32>
    %79 = arith.addf %77, %78 : vector<16x128xf32>
    %cst_24 = arith.constant 0.000000e+00 : f32
    %80 = vector.broadcast %cst_24 : f32 to vector<16x128xf32>
    %81 = arith.maximumf %79, %80 : vector<16x128xf32>
    %cst_25 = arith.constant dense<0.000000e+00> : vector<16x128xf32>
    %82 = tpu.matmul %81, %10, %cst_25 {dimension_numbers = #tpu.dot_dimension_numbers<[1], [0], [0], [1], [0, 0, 1, 1], [], []>} : vector<16x128xf32>, vector<128x128xf32>, vector<16x128xf32> -> vector<16x128xf32>
    %83 = vector.broadcast %18 : vector<1x128xf32> to vector<16x128xf32>
    %84 = arith.addf %82, %83 : vector<16x128xf32>
    %c0_26 = arith.constant 0 : index
    %c0_27 = arith.constant 0 : index
    %85 = vector.load %arg5[%c0_26, %c0_27] : memref<16x128xf32, #tpu.memory_space<vmem>>, vector<16x128xf32>
    tpu.vector_store %arg5[%c0_26, %c0_27], %84 {strides = array<i32>} : memref<16x128xf32, #tpu.memory_space<vmem>>, vector<16x128xf32>,
    return
  }
  func.func @transform_0(%arg0: i32) -> (i32, i32) {
    %c0_i32 = arith.constant 0 : i32
    %c0_i32_0 = arith.constant 0 : i32
    return %arg0, %c0_i32 : i32, i32
  }
  func.func @transform_1(%arg0: i32) -> (i32, i32) {
    %c0_i32 = arith.constant 0 : i32
    %c0_i32_0 = arith.constant 0 : i32
    return %arg0, %c0_i32 : i32, i32
  }
  func.func @transform_2(%arg0: i32) -> (i32, i32) {
    %c0_i32 = arith.constant 0 : i32
    %c0_i32_0 = arith.constant 0 : i32
    %c0_i32_1 = arith.constant 0 : i32
    return %c0_i32, %c0_i32_0 : i32, i32
  }
  func.func @transform_3(%arg0: i32) -> (i32, i32) {
    %c0_i32 = arith.constant 0 : i32
    %c0_i32_0 = arith.constant 0 : i32
    %c0_i32_1 = arith.constant 0 : i32
    return %c0_i32, %c0_i32_0 : i32, i32
  }
  func.func @transform_4(%arg0: i32) -> (i32, i32) {
    %c0_i32 = arith.constant 0 : i32
    %c0_i32_0 = arith.constant 0 : i32
    return %arg0, %c0_i32 : i32, i32
  }
}

</mosaic_0001>

<bundles_post_ra>
// kernel: edge_embedding_forward.1
= control target key start
LH: loop header
LB: loop body
LE: loop exit
PB: predicated region body
PF: predicated region fallthrough
CT: control target
= control target key end

     0   :  { %9 = vsyncpa [#allocation3], 0  ;;  %s731_s15 = smov [#allocation2]   ;;  %s822_s0 = inlined_call_operand.vmem [shape: s32[16,1], index: 0, kind: input, shape index: {}]   ;;  %s823_s1 = inlined_call_operand.vmem [shape: f32[16,8], index: 1, kind: input, shape index: {}]   ;;  %s824_s2 = inlined_call_operand.hbm [shape: f32[272,128], index: 2, kind: input, shape index: {}]   ;;  %s825_s3 = inlined_call_operand.vmem [shape: f32[8,128], index: 3, kind: input, shape index: {}]   ;;  %s826_s4 = inlined_call_operand.vmem [shape: f32[16,128], index: 4, kind: output, shape index: {}]  }
   0x1   :  { %s19_s16 = sshll.u32 %s731_s15, 4  ;;  %s707_s19 = scalar_lea.hbm %s824_s2, 4352  ;;  %s20_s16 = int_to_ptr.vmem [resolvable:$true] %s19_s16 }
   0x2   :  { %p708_p0 = scmp.ne.s32.totalorder %s824_s2, %s707_s19  ;;  %p711_p1 = scmp.lt.u32.totalorder %s707_s19, %s824_s2 }
   0x4   :  { %p713_p2 = pnand %p711_p1, %p708_p0 }
   0x6   :  { %716 = shalt.err (!%p713_p2)
}
   0x7   :  { %s717_s24 = scalar_lea.vmem %s20_s16, 4352  ;;  %p722_p4 = scmp.lt.s32.totalorder %s20_s16, %s20_s16 }
   0x8   :  { %p718_p3 = scmp.ne.s32.totalorder %s20_s16, %s717_s24  ;;  %p723_p5 = scmp.lt.s32.totalorder %s717_s24, %s717_s24 }
   0xa   :  { %p724_p6 = por %p723_p5, %p722_p4 }
   0xc   :  { %p725_p7 = pnand %p724_p6, %p718_p3 }
   0xe   :  { %728 = shalt.err (!%p725_p7)
}
   0xf   :  { %s732_s25 = smov 128   ;;  %s733_s26 = smov 8  }
  0x10   :  { %25 = dma.hbm_to_vmem [thread:$0]  %s824_s2, 4352, %s20_s16, [#allocation3], %s732_s25, %s732_s25, %s733_s26  }
  0x11   :  { %729 = dma.done.wait [#allocation3], 4352  }
  0x12   :  { %730 = vsyncadd [#allocation3], 4294962944  ;;  %v734_v0 = vmov 0   ;;  %v31_v1 = vld [vmem:[%s822_s0] sm:$0xff]  ;;  %v32_v2 = vld [vmem:[%s822_s0 + $0x8] sm:$0xff]  ;;  %vm84_vm0 = vcmask 64512   ;;  %v35_v7 = vlaneseq }
  0x13   :  { %698 = vset.pattern.permute.xlu0 %v734_v0  ;;  %v50_v3 = vld [vmem:[#allocation2 + $0x8] sm:$0xff]  ;;  %v33_v4 = vld [vmem:[%s823_s1] sm:$0xff]  ;;  %v735_v10 = vmov 0.0   ;;  %v51_v26 = vld [vmem:[#allocation2 + $0x10] sm:$0xff] }
  0x14   :  { %38 = vperm.xlu0 %698, %v31_v1   ;;  %547 = vmatprep.subr.mxu1 %v50_v3  ;;  %v49_v5 = vld [vmem:[#allocation2] sm:$0xff]  ;;  %v34_v6 = vld [vmem:[%s823_s1 + $0x8] sm:$0xff]  ;;  %v36_v8 = vand.u32 127, %v35_v7  ;;  %v789_v16 = vshrl.u32 %v35_v7, 7  ;;  %v52_v27 = vld [vmem:[#allocation2 + $0x18] sm:$0xff] }
  0x15   :  { %548 = vmatpush3.msra.mxu1 %v50_v3  ;;  %549 = vmatprep.mubr.msk.f32.mxu1 %vm84_vm0, %v33_v4  ;;  %v795_v18 = vld [vmem:[%s825_s3] sm:$0xff]  ;;  %v627_v29 = vpack.c.bf16 %v52_v27, %v51_v26  ;;  %v54_v30 = vld [vmem:[#allocation2 + $0x28] sm:$0xff]  ;;  %v55_v43 = vld [vmem:[#allocation2 + $0x30] sm:$0xff] }
  0x16   :  { %552 = vmatprep.subr.mxu0 %v49_v5  ;;  %550 = vmatmul.mubr.msk.f32.vlgmr.msra.gmra.mrb[0].mxu1 %vm84_vm0, %v34_v6  ;;  %v249_v17 = vsub.s32 0, %v789_v16  ;;  %v53_v28 = vld [vmem:[#allocation2 + $0x20] sm:$0xff]  ;;  %vm253_vm3 = vcmp.lt.s32.totalorder %v36_v8, 32  ;;  %v56_v44 = vld [vmem:[#allocation2 + $0x38] sm:$0xff]  ;;  %v58_v47 = vld [vmem:[#allocation2 + $0x48] sm:$0xff]  ;;  %v283_v3 = vsub.s32 1, %v789_v16 }
  0x17   :  { %553 = vmatpush3.msra.mxu0 %v49_v5  ;;  %v631_v31 = vpack.c.bf16 %v54_v30, %v53_v28  ;;  %628 = vmatprep.subr.bf16.mxu1 %v627_v29  ;;  %v798_v34 = vsel %vm253_vm3, 1.0, %v735_v10  ;;  %v635_v45 = vpack.c.bf16 %v56_v44, %v55_v43  ;;  %v57_v46 = vld [vmem:[#allocation2 + $0x40] sm:$0xff]  ;;  %v59_v49 = vld [vmem:[#allocation2 + $0x50] sm:$0xff]  ;;  %v60_v50 = vld [vmem:[#allocation2 + $0x58] sm:$0xff]  ;;  %v289_v4 = vsub.s32 2, %v789_v16 }
  0x18   :  { %41 = vperm.xlu0 %698, %v32_v2   ;;  %v250_v20 = vrot.slane %v795_v18, %v249_v17  ;;  %630 = vmatpush3.bf16.msra.mxu1 %v627_v29  ;;  %v639_v48 = vpack.c.bf16 %v58_v47, %v57_v46  ;;  %v61_v51 = vld [vmem:[#allocation2 + $0x60] sm:$0xff]  ;;  %v643_v52 = vpack.c.bf16 %v60_v50, %v59_v49  ;;  %v62_v53 = vld [vmem:[#allocation2 + $0x68] sm:$0xff]  ;;  %v63_v55 = vld [vmem:[#allocation2 + $0x70] sm:$0xff] }
  0x19   :  { %632 = vmatprep.subr.bf16.mxu1 %v631_v31  ;;  %v647_v54 = vpack.c.bf16 %v62_v53, %v61_v51  ;;  %v64_v56 = vld [vmem:[#allocation2 + $0x78] sm:$0xff]  ;;  %v65_v58 = vld [vmem:[#allocation2 + $0x80] sm:$0xff]  ;;  %v66_v59 = vld [vmem:[#allocation2 + $0x88] sm:$0xff]  ;;  %v284_v5 = vrot.slane %v795_v18, %v283_v3 }
  0x1a   :  { %v651_v57 = vpack.c.bf16 %v64_v56, %v63_v55  ;;  %v655_v60 = vpack.c.bf16 %v66_v59, %v65_v58  ;;  %v68_v26 = vld [vmem:[#allocation2 + $0x98] sm:$0xff]  ;;  %v69_v27 = vld [vmem:[#allocation2 + $0xa0] sm:$0xff]  ;;  %v70_v29 = vld [vmem:[#allocation2 + $0xa8] sm:$0xff] }
  0x1b   :  { %v663_v30 = vpack.c.bf16 %v70_v29, %v69_v27  ;;  %v72_v43 = vld [vmem:[#allocation2 + $0xb8] sm:$0xff]  ;;  %v74_v46 = vld [vmem:[#allocation2 + $0xc8] sm:$0xff]  ;;  %v77_v51 = vld [vmem:[#allocation2 + $0xe0] sm:$0xff] }
  0x1c   :  { %634 = vmatpush3.bf16.msra.mxu1 %v631_v31  ;;  %v76_v49 = vld [vmem:[#allocation2 + $0xd8] sm:$0xff]  ;;  %v79_v53 = vld [vmem:[#allocation2 + $0xf0] sm:$0xff]  ;;  %v81_v56 = vld [vmem:[#allocation2 + $0x100] sm:$0xff] }
  0x1d   :  { %636 = vmatprep.subr.bf16.mxu1 %v635_v45 }
  0x20   :  { %638 = vmatpush3.bf16.msra.mxu1 %v635_v45  ;;  %v73_v45 = vld [vmem:[#allocation2 + $0xc0] sm:$0xff] }
  0x21   :  { %640 = vmatprep.subr.bf16.mxu1 %v639_v48  ;;  %v671_v47 = vpack.c.bf16 %v74_v46, %v73_v45 }
  0x24   :  { %642 = vmatpush3.bf16.msra.mxu1 %v639_v48  ;;  %v75_v48 = vld [vmem:[#allocation2 + $0xd0] sm:$0xff] }
  0x25   :  { %644 = vmatprep.subr.bf16.mxu1 %v643_v52  ;;  %v675_v50 = vpack.c.bf16 %v76_v49, %v75_v48 }
  0x28   :  { %646 = vmatpush3.bf16.msra.mxu1 %v643_v52  ;;  %v78_v52 = vld [vmem:[#allocation2 + $0xe8] sm:$0xff] }
  0x29   :  { %648 = vmatprep.subr.bf16.mxu1 %v647_v54 }
  0x2c   :  { %650 = vmatpush3.bf16.msra.mxu1 %v647_v54  ;;  %v80_v54 = vld [vmem:[#allocation2 + $0xf8] sm:$0xff] }
  0x2d   :  { %652 = vmatprep.subr.bf16.mxu1 %v651_v57  ;;  %v683_v55 = vpack.c.bf16 %v80_v54, %v79_v53 }
  0x30   :  { %654 = vmatpush3.bf16.msra.mxu1 %v651_v57  ;;  %v82_v57 = vld [vmem:[#allocation2 + $0x108] sm:$0xff] }
  0x31   :  { %656 = vmatprep.subr.bf16.mxu1 %v655_v60  ;;  %v687_v58 = vpack.c.bf16 %v82_v57, %v81_v56 }
  0x34   :  { %658 = vmatpush3.bf16.msra.mxu1 %v655_v60 }
  0x93   :  { %v39_v9 = vpop.permute.xlu0 %38 }
  0x94   :  { %vm43_vm1 = vcmp.eq.s32.totalorder %v36_v8, %v39_v9 }
  0x95   :  { %v498_v11 = vsel %vm43_vm1, 1.0, %v735_v10 }
  0x96   :  { %554 = vmatprep.mubr.msk.f32.mxu0 %vm84_vm0, %v498_v11 }
  0x97   :  { %v42_v12 = vpop.permute.xlu0 %41 }
  0x98   :  { %vm44_vm2 = vcmp.eq.s32.totalorder %v36_v8, %v42_v12  ;;  %v290_v8 = vrot.slane %v795_v18, %v289_v4 }
  0x99   :  { %v499_v13 = vsel %vm44_vm2, 1.0, %v735_v10 }
  0x9a   :  { %555 = vmatmul.mubr.msk.f32.vlgmr.msra.gmra.mrb[0].mxu0 %vm84_vm0, %v499_v13 }
  0xe9   :  { %v551_v14 = vpop.f32.mrb[0].mxu1 }
  0xea   :  { %v157_v15 = vpop.f32.mrb[1].mxu1 }
 0x16d   :  { %v556_v19 = vpop.f32.mrb[0].mxu0 }
 0x16e   :  { %v244_v21 = vadd.f32 %v556_v19, %v551_v14  ;;  %v238_v22 = vpop.f32.mrb[1].mxu0  ;;  %v297_v19 = vsub.s32 3, %v789_v16 }
 0x16f   :  { %v239_v23 = vadd.f32 %v238_v22, %v157_v15 }
 0x170   :  { %v252_v25 = vadd.f32 %v250_v20, %v244_v21 }
 0x171   :  { %v251_v24 = vadd.f32 %v250_v20, %v239_v23  ;;  %v298_v20 = vrot.slane %v795_v18, %v297_v19 }
 0x173   :  { %256 = vadd.xlane.f32.xlu1 %v251_v24 }
 0x177   :  { %258 = vadd.xlane.f32.xlu1 %v252_v25 }
 0x200   :  { %v257_v32 = vpop.xlane.xlu1 %256 }
 0x201   :  { %v261_v33 = vmul.f32 0.03125, %v257_v32 }
 0x203   :  { %v263_v35 = vsub.f32 %v251_v24, %v261_v33 }
 0x204   :  { %v259_v36 = vpop.xlane.xlu1 %258 }
 0x205   :  { %v262_v37 = vmul.f32 0.03125, %v259_v36  ;;  %v265_v38 = vmul.f32 %v798_v34, %v263_v35 }
 0x207   :  { %v264_v39 = vsub.f32 %v252_v25, %v262_v37  ;;  %v267_v40 = vmul.f32 %v265_v38, %v265_v38  ;;  %v67_v25 = vld [vmem:[#allocation2 + $0x90] sm:$0xff] }
 0x208   :  { %v659_v28 = vpack.c.bf16 %v68_v26, %v67_v25 }
 0x209   :  { %269 = vadd.xlane.f32.xlu0 %v267_v40  ;;  %v266_v41 = vmul.f32 %v798_v34, %v264_v39 }
 0x20a   :  { %660 = vmatprep.subr.bf16.mxu0 %v659_v28 }
 0x20b   :  { %v268_v42 = vmul.f32 %v266_v41, %v266_v41  ;;  %662 = vmatpush3.bf16.msra.mxu0 %v659_v28 }
 0x20c   :  { %664 = vmatprep.subr.bf16.mxu0 %v663_v30 }
 0x20d   :  { %271 = vadd.xlane.f32.xlu1 %v268_v42  ;;  %v71_v42 = vld [vmem:[#allocation2 + $0xb0] sm:$0xff] }
 0x20e   :  { %v667_v44 = vpack.c.bf16 %v72_v43, %v71_v42 }
 0x20f   :  { %666 = vmatpush3.bf16.msra.mxu0 %v663_v30 }
 0x210   :  { %668 = vmatprep.subr.bf16.mxu0 %v667_v44 }
 0x213   :  { %670 = vmatpush3.bf16.msra.mxu0 %v667_v44 }
 0x214   :  { %672 = vmatprep.subr.bf16.mxu0 %v671_v47 }
 0x217   :  { %674 = vmatpush3.bf16.msra.mxu0 %v671_v47 }
 0x218   :  { %676 = vmatprep.subr.bf16.mxu0 %v675_v50 }
 0x21b   :  { %678 = vmatpush3.bf16.msra.mxu0 %v675_v50 }
 0x296   :  { %v270_v61 = vpop.xlane.xlu0 %269 }
 0x297   :  { %v273_v62 = vmul.f32 0.03125, %v270_v61 }
 0x299   :  { %v275_v63 = vadd.f32 1e-05, %v273_v62 }
 0x29a   :  { %v272_v0 = vpop.xlane.xlu1 %271 }
 0x29b   :  { %699 = vrsqrt.f32 %v275_v63  ;;  %v274_v1 = vmul.f32 0.03125, %v272_v0 }
 0x29d   :  { %v276_v2 = vadd.f32 1e-05, %v274_v1  ;;  %v400_v1 = vsub.s32 4, %v789_v16 }
 0x29f   :  { %701 = vrsqrt.f32 %v276_v2  ;;  %v406_v2 = vsub.s32 5, %v789_v16  ;;  %v401_v3 = vrot.slane %v795_v18, %v400_v1 }
 0x2a5   :  { %v700_v6 = vpop.eup %699 }
 0x2a6   :  { %v279_v7 = vmul.f32 %v700_v6, %v265_v38  ;;  %v407_v6 = vrot.slane %v795_v18, %v406_v2 }
 0x2a8   :  { %v285_v9 = vmul.f32 %v284_v5, %v279_v7 }
 0x2a9   :  { %v702_v10 = vpop.eup %701 }
 0x2aa   :  { %v291_v11 = vadd.f32 %v290_v8, %v285_v9  ;;  %v280_v12 = vmul.f32 %v702_v10, %v266_v41 }
 0x2ac   :  { %v293_v13 = vmax.f32 %v291_v11, 0.0  ;;  %v286_v14 = vmul.f32 %v284_v5, %v280_v12 }
 0x2ae   :  { %589 = vmatprep.mubr.f32.mxu1 %v293_v13  ;;  %v292_v15 = vadd.f32 %v290_v8, %v286_v14 }
 0x2b0   :  { %v294_v17 = vmax.f32 %v292_v15, 0.0  ;;  %v414_v15 = vsub.s32 6, %v789_v16 }
 0x2b2   :  { %590 = vmatmul.mubr.f32.vlgmr.msra.gmra.mrb[2].mxu1 %v294_v17  ;;  %v415_v17 = vrot.slane %v795_v18, %v414_v15 }
 0x385   :  { %v591_v21 = vpop.f32.mrb[2].mxu1 }
 0x386   :  { %v365_v22 = vpop.f32.mrb[3].mxu1  ;;  %v371_v24 = vadd.f32 %v591_v21, %v298_v20 }
 0x387   :  { %v366_v23 = vadd.f32 %v365_v22, %v298_v20 }
 0x389   :  { %374 = vadd.xlane.f32.xlu1 %v366_v23 }
 0x38d   :  { %376 = vadd.xlane.f32.xlu1 %v371_v24 }
 0x416   :  { %v375_v31 = vpop.xlane.xlu1 %374 }
 0x417   :  { %v378_v32 = vmul.f32 0.03125, %v375_v31 }
 0x419   :  { %v380_v33 = vsub.f32 %v366_v23, %v378_v32 }
 0x41a   :  { %v377_v35 = vpop.xlane.xlu1 %376 }
 0x41b   :  { %v379_v36 = vmul.f32 0.03125, %v377_v35  ;;  %v382_v37 = vmul.f32 %v798_v34, %v380_v33 }
 0x41d   :  { %v381_v38 = vsub.f32 %v371_v24, %v379_v36  ;;  %v384_v39 = vmul.f32 %v382_v37, %v382_v37 }
 0x41f   :  { %386 = vadd.xlane.f32.xlu1 %v384_v39  ;;  %v383_v40 = vmul.f32 %v798_v34, %v381_v38  ;;  %v679_v34 = vpack.c.bf16 %v78_v52, %v77_v51 }
 0x421   :  { %v385_v41 = vmul.f32 %v383_v40, %v383_v40  ;;  %680 = vmatprep.subr.bf16.mxu0 %v679_v34 }
 0x422   :  { %682 = vmatpush3.bf16.msra.mxu0 %v679_v34 }
 0x423   :  { %388 = vadd.xlane.f32.xlu1 %v385_v41  ;;  %684 = vmatprep.subr.bf16.mxu0 %v683_v55 }
 0x426   :  { %686 = vmatpush3.bf16.msra.mxu0 %v683_v55 }
 0x427   :  { %688 = vmatprep.subr.bf16.mxu0 %v687_v58 }
 0x42a   :  { %690 = vmatpush3.bf16.msra.mxu0 %v687_v58 }
 0x4ac   :  { %v387_v59 = vpop.xlane.xlu1 %386 }
 0x4ad   :  { %v390_v60 = vmul.f32 0.03125, %v387_v59 }
 0x4af   :  { %v392_v61 = vadd.f32 1e-05, %v390_v60 }
 0x4b0   :  { %v389_v62 = vpop.xlane.xlu1 %388 }
 0x4b1   :  { %703 = vrsqrt.f32 %v392_v61  ;;  %v391_v63 = vmul.f32 0.03125, %v389_v62 }
 0x4b3   :  { %v393_v0 = vadd.f32 1e-05, %v391_v63 }
 0x4b5   :  { %705 = vrsqrt.f32 %v393_v0 }
 0x4bb   :  { %v704_v4 = vpop.eup %703 }
 0x4bc   :  { %v396_v5 = vmul.f32 %v704_v4, %v382_v37 }
 0x4be   :  { %v402_v7 = vmul.f32 %v401_v3, %v396_v5 }
 0x4bf   :  { %v706_v8 = vpop.eup %705 }
 0x4c0   :  { %v397_v9 = vmul.f32 %v706_v8, %v383_v40  ;;  %v408_v10 = vadd.f32 %v407_v6, %v402_v7 }
 0x4c2   :  { %v410_v11 = vmax.f32 %v408_v10, 0.0  ;;  %v403_v12 = vmul.f32 %v401_v3, %v397_v9 }
 0x4c4   :  { %624 = vmatprep.mubr.f32.mxu0 %v410_v11  ;;  %v409_v13 = vadd.f32 %v407_v6, %v403_v12 }
 0x4c6   :  { %v411_v14 = vmax.f32 %v409_v13, 0.0 }
 0x4c8   :  { %625 = vmatmul.mubr.f32.vlgmr.msra.gmra.mrb[2].mxu0 %v411_v14 }
 0x59b   :  { %v626_v19 = vpop.f32.mrb[2].mxu0 }
 0x59c   :  { %v488_v20 = vadd.f32 %v626_v19, %v415_v17  ;;  %v482_v21 = vpop.f32.mrb[3].mxu0 }
 0x59d   :  { %v483_v22 = vadd.f32 %v482_v21, %v415_v17 }
 0x59e   :  { %492 = vst [vmem:[%s826_s4 + $0x8] sm:$0xff] %v488_v20 }
 0x59f   :  { %491 = vst [vmem:[%s826_s4] sm:$0xff] %v483_v22 }
 0x5a0   :  { %497 = vsyncpa [#allocation3], 1 }

</bundles_post_ra>
